<compile_context>
chip_gen: v6e
topology: v6e:2x2x1
jax: 0.10.0
libtpu: 0.0.40
codegen_flags: <defaults>
</compile_context>

<pallas_src>
import jax
import jax.numpy as jnp
from jax.experimental import pallas as pl
from jax.experimental.pallas import tpu as pltpu


def _round_up(x, m):
    return (x + m - 1) // m * m


def _tdnn_kernel(p_ref, w_ref, b_ref, o_ref):
    """One fused MXU matmul per (batch, time-tile) grid step.

    p_ref : (1, H*K, T_TILE)  im2col patch tile (lane dim is a multiple of 128)
    w_ref : (O, H*K)          flattened weight, resident in VMEM across the grid
    b_ref : (O, 1)            bias
    o_ref : (1, O, T_TILE)    output tile
    """
    acc = jnp.dot(w_ref[...], p_ref[0], preferred_element_type=jnp.float32)
    acc = acc + b_ref[...].astype(jnp.float32)
    o_ref[0] = acc.astype(o_ref.dtype)


def tdnn_forward(x, weight, bias, *, stride=1, padding=0, dilation=1,
                 compute_dtype=None, time_tile=512):
    """x: (N, 1, input_size, T); weight: (output_size, 1, input_size, K); bias: (output_size,).

    compute_dtype: optionally cast matmul operands (e.g. jnp.bfloat16) while
    keeping f32 accumulation and the input dtype for the output.
    """
    # The module's .view only makes sense when the conv output height is 1,
    # which requires padding == 0; default stride == 1 assumed.
    assert padding == 0, "padding != 0 would break the .view in the reference module"
    assert stride == 1
    # TODO(synk): stride > 1 would need a strided time subsampling of the patches.

    n, c, h, t = x.shape
    assert c == 1
    out_ch, cin, in_h, ksz = weight.shape
    assert cin == 1 and in_h == h
    t_out = t - dilation * (ksz - 1)
    assert t_out > 0, "sequence shorter than the receptive field"

    out_dtype = x.dtype
    x_s = x[:, 0]  # (N, H, T)

    # im2col: patch row (k*H + h) holds x[:, h, t + k*dilation].
    patches = jnp.concatenate(
        [x_s[:, :, k * dilation:k * dilation + t_out] for k in range(ksz)],
        axis=1,
    )  # (N, H*K, T_out)

    # Flattened weight matching the patch row order: w_flat[o, k*H + h] = weight[o, 0, h, k].
    w_flat = jnp.transpose(weight[:, 0], (0, 2, 1)).reshape(out_ch, ksz * h)
    b2 = bias.reshape(out_ch, 1)

    if compute_dtype is not None:
        patches = patches.astype(compute_dtype)
        w_flat = w_flat.astype(compute_dtype)

    hk = ksz * h

    # Time-axis tiling: lane dim a multiple of 128, padded so t_tile | t_pad.
    t_tile = min(time_tile, _round_up(t_out, 128))
    t_pad = _round_up(t_out, t_tile)
    if t_pad != t_out:
        patches = jnp.pad(patches, ((0, 0), (0, 0), (0, t_pad - t_out)))
    n_t = t_pad // t_tile

    out = pl.pallas_call(
        _tdnn_kernel,
        out_shape=jax.ShapeDtypeStruct((n, out_ch, t_pad), out_dtype),
        grid_spec=pltpu.PrefetchScalarGridSpec(
            num_scalar_prefetch=0,
            grid=(n, n_t),
            in_specs=[
                pl.BlockSpec((1, hk, t_tile), lambda i, j: (i, 0, j)),
                pl.BlockSpec((out_ch, hk), lambda i, j: (0, 0)),
                pl.BlockSpec((out_ch, 1), lambda i, j: (0, 0)),
            ],
            out_specs=pl.BlockSpec((1, out_ch, t_tile), lambda i, j: (i, 0, j)),
        ),
        compiler_params=pltpu.CompilerParams(
            dimension_semantics=("parallel", "parallel"),
        ),
    )(patches, w_flat, b2)

    out = out[:, :, :t_out]
    # PyTorch: output.view(N, 1, output_size, T_out)
    return out.reshape(n, 1, out_ch, t_out)


def tdnn_reference(x, weight, bias, *, dilation=1):
    """Pure-JAX reference matching the PyTorch forward."""
    n, _, h, t = x.shape
    out_ch, _, _, ksz = weight.shape
    t_out = t - dilation * (ksz - 1)
    patches = jnp.stack(
        [x[:, 0, :, k * dilation:k * dilation + t_out] for k in range(ksz)],
        axis=-1,
    )  # (N, H, T_out, K)
    out = jnp.einsum("nhtk,ohk->not", patches, weight[:, 0]) + bias[None, :, None]
    return out.reshape(n, 1, out_ch, t_out)


if __name__ == "__main__":
    key = jax.random.PRNGKey(0)
    k_x, k_w, k_x2, k_w2 = jax.random.split(key, 4)

    # ---- Case 1: module defaults, f32 operands ----
    N, input_size, T = 2, 16, 16
    output_size, kernel_size = 32, 3

    x = jax.random.normal(k_x, (N, 1, input_size, T), dtype=jnp.float32)

    # Deterministic xavier_normal_ equivalent for conv weight (out, in, kH, kW),
    # bias initialized to 0 (init.constant_(bias, 0.0)).
    fan_in = 1 * input_size * kernel_size
    fan_out = output_size * input_size * kernel_size
    std = (2.0 / (fan_in + fan_out)) ** 0.5
    weight = std * jax.random.normal(
        k_w, (output_size, 1, input_size, kernel_size), dtype=jnp.float32
    )
    bias = jnp.zeros((output_size,), dtype=jnp.float32)

    out = tdnn_forward(x, weight, bias)
    jax.block_until_ready(out)
    ref = tdnn_reference(x, weight, bias)
    assert out.shape == (N, 1, output_size, T - kernel_size + 1), out.shape
    assert jnp.allclose(out, ref, atol=1e-4, rtol=1e-4), float(jnp.max(jnp.abs(out - ref)))

    # ---- Case 2: dilation > 1, odd feature dim, bf16 operands (f32 accumulation) ----
    N2, in2, T2, out2, ks2, d2 = 1, 20, 300, 64, 5, 2
    x2 = jax.random.normal(k_x2, (N2, 1, in2, T2), dtype=jnp.float32)
    w2 = 0.05 * jax.random.normal(k_w2, (out2, 1, in2, ks2), dtype=jnp.float32)
    b2 = 0.1 * jnp.ones((out2,), dtype=jnp.float32)

    out_bf = tdnn_forward(x2, w2, b2, dilation=d2, compute_dtype=jnp.bfloat16)
    jax.block_until_ready(out_bf)
    ref2 = tdnn_reference(x2, w2, b2, dilation=d2)
    assert out_bf.shape == ref2.shape, out_bf.shape
    err = float(jnp.max(jnp.abs(out_bf - ref2)))
    assert err < 5e-2, err

    print("KERNEL_OK")
</pallas_src>

<mosaic_0001>
module attributes {stable_mosaic.version = 11 : i64} {
  func.func @_tdnn_kernel(%arg0: i32, %arg1: i32, %arg2: memref<1x48x128xf32, #tpu.memory_space<vmem>>, %arg3: memref<32x48xf32, #tpu.memory_space<vmem>>, %arg4: memref<32x1xf32, #tpu.memory_space<vmem>>, %arg5: memref<1x32x128xf32, #tpu.memory_space<vmem>>) attributes {dimension_semantics = [#tpu.dimension_semantics<parallel>, #tpu.dimension_semantics<parallel>], iteration_bounds = array<i64: 2, 1>, scalar_prefetch = 0 : i64, scratch_operands = 0 : i64, tpu.core_type = #tpu.core_type<tc>, window_params = [{transform_indices = @transform_0, window_bounds = array<i64: 1, 48, 128>}, {pipeline_mode = #tpu.pipeline_mode<synchronous>, transform_indices = @transform_1, window_bounds = array<i64: 32, 48>}, {pipeline_mode = #tpu.pipeline_mode<synchronous>, transform_indices = @transform_2, window_bounds = array<i64: 32, 1>}, {transform_indices = @transform_3, window_bounds = array<i64: 1, 32, 128>}]} {
    %c0 = arith.constant 0 : index
    %c0_0 = arith.constant 0 : index
    %0 = vector.load %arg3[%c0, %c0_0] : memref<32x48xf32, #tpu.memory_space<vmem>>, vector<32x48xf32>
    %c0_1 = arith.constant 0 : index
    %c0_2 = arith.constant 0 : index
    %c0_3 = arith.constant 0 : index
    %1 = vector.load %arg2[%c0_1, %c0_2, %c0_3] : memref<1x48x128xf32, #tpu.memory_space<vmem>>, vector<1x48x128xf32>
    %2 = vector.shape_cast %1 : vector<1x48x128xf32> to vector<48x128xf32>
    %cst = arith.constant dense<0.000000e+00> : vector<32x128xf32>
    %3 = tpu.matmul %0, %2, %cst {dimension_numbers = #tpu.dot_dimension_numbers<[1], [0], [0], [1], [0, 0, 1, 1], [], []>} : vector<32x48xf32>, vector<48x128xf32>, vector<32x128xf32> -> vector<32x128xf32>
    %c0_4 = arith.constant 0 : index
    %c0_5 = arith.constant 0 : index
    %4 = vector.load %arg4[%c0_4, %c0_5] : memref<32x1xf32, #tpu.memory_space<vmem>>, vector<32x1xf32>
    %5 = vector.broadcast %4 : vector<32x1xf32> to vector<32x128xf32>
    %6 = arith.addf %3, %5 : vector<32x128xf32>
    %c0_6 = arith.constant 0 : index
    %c0_7 = arith.constant 0 : index
    %c0_8 = arith.constant 0 : index
    %7 = vector.load %arg5[%c0_6, %c0_7, %c0_8] : memref<1x32x128xf32, #tpu.memory_space<vmem>>, vector<1x32x128xf32>
    %8 = vector.shape_cast %7 : vector<1x32x128xf32> to vector<32x128xf32>
    %9 = vector.shape_cast %6 : vector<32x128xf32> to vector<1x32x128xf32>
    tpu.vector_store %arg5[%c0_6, %c0_7, %c0_8], %9 {strides = array<i32>} : memref<1x32x128xf32, #tpu.memory_space<vmem>>, vector<1x32x128xf32>,
    return
  }
  func.func @transform_0(%arg0: i32, %arg1: i32) -> (i32, i32, i32) {
    %c0_i32 = arith.constant 0 : i32
    %c0_i32_0 = arith.constant 0 : i32
    return %arg0, %c0_i32, %arg1 : i32, i32, i32
  }
  func.func @transform_1(%arg0: i32, %arg1: i32) -> (i32, i32) {
    %c0_i32 = arith.constant 0 : i32
    %c0_i32_0 = arith.constant 0 : i32
    %c0_i32_1 = arith.constant 0 : i32
    return %c0_i32, %c0_i32_0 : i32, i32
  }
  func.func @transform_2(%arg0: i32, %arg1: i32) -> (i32, i32) {
    %c0_i32 = arith.constant 0 : i32
    %c0_i32_0 = arith.constant 0 : i32
    %c0_i32_1 = arith.constant 0 : i32
    return %c0_i32, %c0_i32_0 : i32, i32
  }
  func.func @transform_3(%arg0: i32, %arg1: i32) -> (i32, i32, i32) {
    %c0_i32 = arith.constant 0 : i32
    %c0_i32_0 = arith.constant 0 : i32
    return %arg0, %c0_i32, %arg1 : i32, i32, i32
  }
}

</mosaic_0001>

<bundles_post_ra>
// kernel: tpu_custom_call.1
= control target key start
LH: loop header
LB: loop body
LE: loop exit
PB: predicated region body
PF: predicated region fallthrough
CT: control target
= control target key end

     0   :  { %8 = vsyncpa [#allocation3], 0  ;;  %s879_s0 = inlined_call_operand.hbm [shape: f32[2,48,128], index: 0, kind: input, shape index: {}]   ;;  %s880_s1 = inlined_call_operand.vmem [shape: f32[32,48], index: 1, kind: input, shape index: {}]   ;;  %s881_s2 = inlined_call_operand.vmem [shape: f32[32,1], index: 2, kind: input, shape index: {}]   ;;  %s882_s3 = inlined_call_operand.hbm [shape: f32[2,32,128], index: 3, kind: output, shape index: {}]  }
   0x1   :  { %10 = vsyncpa [#allocation3 + $0x1], 0 }
   0x2   :  { %11 = vsyncpa [#allocation4], 0 }
   0x3   :  { %13 = vsyncpa [#allocation4 + $0x1], 0  ;;  %s708_s12 = smov 0   ;;  %s710_s13 = smov 0  }
   0x4   :  { %s712_s14 = smov 0   ;;  %s714_s15 = smov 0  }
   0x5   :  { %s716_s16 = smov 0   ;;  %s718_s17 = smov 0  }
   0x6 LB: > { %s442_s18 = sadd.s32 4294967295, %s679_s17   ;;  %s443_s19 = sadd.s32 4294967294, %s679_s17   ;;  %s679_s17 = sphi %s718_s17, %s19_s17   ;;  %s675_s16 = sphi %s716_s16, %s893_s16   ;;  %s671_s15 = sphi %s714_s15, %s892_s15   ;;  %s667_s14 = sphi %s712_s14, %s891_s14   ;;  %s663_s13 = sphi %s710_s13, %s890_s13   ;;  %s659_s12 = sphi %s708_s12, %s889_s12  }
   0x7   : > { %s31_s20 = sadd.s32 1, %s675_s16  ;;  %s40_s21 = sadd.s32 1, %s667_s14 }
   0x8   : > { %p33_p0 = scmp.ge.s32.totalorder %s31_s20, 2  ;;  %p47_p1 = scmp.ne.s32.totalorder %s667_s14, %s663_s13 }
   0x9   : > { %p48_p2 = scmp.eq.s32.totalorder %s679_s17, 0  ;;  %p53_p3 = scmp.ne.s32.totalorder %s663_s13, %s659_s12 }
   0xa   : > { %s895_s20 = smov (%p33_p0, %s31_s20), 0  ;;  %p54_p5 = scmp.eq.s32.totalorder %s442_s18, 0 }
   0xb   : > { %p749_p4 = por %p48_p2, %p47_p1  ;;  %s35_s23 = ssub.s32 %s675_s16, %s895_s20 }
   0xc   : > { %p121_p6 = scmp.eq.s32.totalorder %s442_s18, 1  ;;  %p38_p7 = scmp.eq.s32.totalorder %s35_s23, 0 }
   0xd   : > { %p755_p8 = por %p54_p5, %p53_p3  ;;  %p127_p10 = scmp.eq.s32.totalorder %s443_s19, 1 }
   0xe   : > { %p759_p9 = por %p121_p6, %p47_p1  ;;  %p514_p13 = scmp.lt.s32.totalorder %s679_s17, 2 }
   0xf   : > { %s764_s26 = scalar_select %p38_p7, %s667_s14, %s40_s21  }
  0x10   : > { %p766_p11 = por %p127_p10, %p53_p3  ;;  %s153_s28 = sand.u32 1, %s667_s14  }
  0x11   : > { %s499_s29 = smul.u32 48, %s153_s28  ;;  %p776_p0 = pnand %p514_p13, %p749_p4 }
  0x12   : > { %s500_s30 = smul.u32 768, %s675_s16  ;;  %p447_p1 = scmp.ge.s32.totalorder %s679_s17, 1 }
  0x13   : > { %s157_s8 = scalar_lea.vmem [#allocation2], %s499_s29  ;;  %s154_s10 = scalar_lea.sflag [#allocation3], %s153_s28 }
  0x14   : > { %s164_s7 = scalar_lea.hbm %s879_s0, %s500_s30  ;;  %s165_s9 = sshll.u32 %s157_s8, 4  ;;  %s166_s9 = int_to_ptr.vmem [resolvable:$true] %s165_s9 }
  0x15   : > { %p573_p2 = pneg %p776_p0  ;;  %s584_s11 = scalar_lea.vmem %s166_s9, 768 }
  0x16   : > { %p585_p3 = scmp.ne.s32.totalorder %s166_s9, %s584_s11  ;;  %s681_s18 = smov [#allocation2]  }
  0x17   : > { %s589_s19 = sshll.u32 %s681_s18, 4  ;;  %s590_s19 = int_to_ptr.vmem [resolvable:$false] %s589_s19 }
  0x18   : > { %p587_p5 = pnand %p585_p3, %p573_p2  ;;  %s591_s21 = scalar_lea.vmem %s590_s19, 1536 }
  0x19   : > { %p592_p4 = scmp.lt.s32.totalorder %s166_s9, %s590_s19  ;;  %p593_p7 = scmp.lt.s32.totalorder %s591_s21, %s584_s11 }
  0x1a   : > { %p588_p6 = pneg %p587_p5 }
  0x1b   : > { %p594_p10 = por %p593_p7, %p592_p4 }
  0x1d   : > { %p595_p13 = pnand %p594_p10, %p588_p6 }
  0x1f   : > { %598 = shalt.err (!%p595_p13)
}
  0x20   : > { %s682_s22 = smov 128   ;;  %s683_s23 = smov 8  }
  0x21   : > { %509 = dma.hbm_to_vmem [thread:$0]  (!%p776_p0), %s164_s7, 768, %s166_s9, %s154_s10, %s682_s22, %s682_s22, %s683_s23  }
  0x22   : > { %p173_p12 = scmp.lt.s32.totalorder %s679_s17, 3 }
  0x24   : > { %p174_p2 = pnand %p447_p1, %p173_p12 }
  0x25   : > { %s792_s28 = sand.u32 (!%p174_p2), 1, %s663_s13  }
  0x26   : > { %177 = sbr.rel (%p174_p2) target bundleno = 270 (0x10e), region = 32  ;;  %s180_s30 = scalar_lea.sflag (!%p174_p2), [#allocation3], %s792_s28 }
  0x27   : > { %s501_s29 = smul.u32 (!%p174_p2), 48, %s792_s28 }
  0x29   : > { %s183_s5 = scalar_lea.vmem (!%p174_p2), [#allocation2], %s501_s29 }
  0x2b   : > { %650 = dma.done.wait (%p755_p8), %s180_s30, 768  }
  0x2c   : > { %652 = vsyncadd (%p755_p8), %s180_s30, 4294966528  ;;  %v684_v0 = vmov 0   ;;  %v215_v1 = vld [vmem:[%s183_s5 + $0x28] sm:$0xff]  ;;  %v214_v2 = vld [vmem:[%s183_s5 + $0x20] sm:$0xff]  ;;  %vm240_vm0 = vcmask 392192   ;;  %s448_s24 = sshll.u32 %s792_s28, 5 }
  0x2d   : > { %570 = vset.pattern.permute.xlu1 %v684_v0  ;;  %569 = vset.pattern.permute.xlu0 %v684_v0  ;;  %v213_v3 = vld [vmem:[%s183_s5 + $0x18] sm:$0xff]  ;;  %v212_v4 = vld [vmem:[%s183_s5 + $0x10] sm:$0xff]  ;;  %v211_v5 = vld [vmem:[%s183_s5 + $0x8] sm:$0xff]  ;;  %s205_s4 = scalar_lea.vmem [#allocation5], %s448_s24  ;;  %s458_s7 = sshll.u32 %s671_s15, 9 }
  0x2e   : > { %469 = vmatprep.subr.mxu0 %v215_v1  ;;  %487 = vmatprep.subr.mxu1 %v215_v1  ;;  %v210_v6 = vld [vmem:[%s183_s5] sm:$0xff]  ;;  %v207_v9 = vld [vmem:[%s880_s1 + $0x8] sm:$0xff]  ;;  %v209_v10 = vld [vmem:[%s880_s1 + $0x18] sm:$0xff]  ;;  %s357_s6 = sshll.u32 %s205_s4, 4  ;;  %s831_s10 = scalar_lea.hbm %s882_s3, %s458_s7  ;;  %s826_s6 = int_to_ptr.vmem [resolvable:$true] %s357_s6 }
  0x2f   : > { %470 = vmatpush3.msra.mxu0 %v215_v1  ;;  %493 = vmatpush3.msra.mxu1 %v215_v1  ;;  %v206_v7 = vld [vmem:[%s880_s1] sm:$0xff]  ;;  %v208_v8 = vld [vmem:[%s880_s1 + $0x10] sm:$0xff]  ;;  %v219_v13 = vld [vmem:[%s881_s2 + $0x18] sm:$0xff]  ;;  %s343_s15 = scalar_lea.sflag [#allocation4], %s792_s28  ;;  %s599_s11 = scalar_lea.vmem %s826_s6, 512 }
  0x30   : > { %471 = vmatprep.subr.mxu0 %v214_v2  ;;  %488 = vmatprep.subr.mxu1 %v214_v2  ;;  %v218_v11 = vld [vmem:[%s881_s2 + $0x10] sm:$0xff]  ;;  %v216_v12 = vld [vmem:[%s881_s2] sm:$0xff]  ;;  %v217_v14 = vld [vmem:[%s881_s2 + $0x8] sm:$0xff]  ;;  %p600_p8 = scmp.ne.s32.totalorder %s826_s6, %s599_s11  ;;  %s685_s18 = smov [#allocation5]  }
  0x31   : > { %472 = vmatpush3.msra.mxu0 %v214_v2  ;;  %494 = vmatpush3.msra.mxu1 %v214_v2  ;;  %s603_s19 = sshll.u32 %s685_s18, 4  ;;  %s604_s19 = int_to_ptr.vmem [resolvable:$false] %s603_s19 }
  0x32   : > { %473 = vmatprep.subr.mxu0 %v213_v3  ;;  %489 = vmatprep.subr.mxu1 %v213_v3  ;;  %p601_p12 = pnand %p600_p8, %p759_p9  ;;  %s605_s21 = scalar_lea.vmem %s604_s19, 1024 }
  0x33   : > { %474 = vmatpush3.msra.mxu0 %v213_v3  ;;  %495 = vmatpush3.msra.mxu1 %v213_v3  ;;  %p606_p1 = scmp.lt.s32.totalorder %s826_s6, %s604_s19  ;;  %p607_p3 = scmp.lt.s32.totalorder %s605_s21, %s599_s11 }
  0x34   : > { %475 = vmatprep.subr.mxu0 %v212_v4  ;;  %490 = vmatprep.subr.mxu1 %v212_v4  ;;  %p602_p0 = pneg %p601_p12 }
  0x35   : > { %476 = vmatpush3.msra.mxu0 %v212_v4  ;;  %496 = vmatpush3.msra.mxu1 %v212_v4  ;;  %p608_p5 = por %p607_p3, %p606_p1 }
  0x36   : > { %477 = vmatprep.subr.mxu0 %v211_v5  ;;  %491 = vmatprep.subr.mxu1 %v211_v5 }
  0x37   : > { %478 = vmatpush3.msra.mxu0 %v211_v5  ;;  %497 = vmatpush3.msra.mxu1 %v211_v5  ;;  %p609_p6 = pnand %p608_p5, %p602_p0 }
  0x38   : > { %479 = vmatprep.subr.mxu0 %v210_v6  ;;  %492 = vmatprep.subr.mxu1 %v210_v6 }
  0x39   : > { %480 = vmatpush3.msra.mxu0 %v210_v6  ;;  %498 = vmatpush3.msra.mxu1 %v210_v6 }
  0x3a   : > { %481 = vmatprep.mubr.msk.f32.mxu0 %vm240_vm0, %v206_v7  ;;  %484 = vmatprep.mubr.msk.f32.mxu1 %vm240_vm0, %v208_v8 }
  0x3b   : > { %482 = vmatmul.mubr.msk.f32.vlgmr.msra.gmra.mxu0 %vm240_vm0, %v207_v9  ;;  %485 = vmatmul.mubr.msk.f32.vlgmr.msra.gmra.mxu1 %vm240_vm0, %v209_v10 }
  0x3c   : > { %232 = vperm.xlu1 %570, %v218_v11   ;;  %222 = vperm.xlu0 %569, %v216_v12  }
  0x40   : > { %237 = vperm.xlu1 %570, %v219_v13   ;;  %227 = vperm.xlu0 %569, %v217_v14  }
  0xb7   : > { %v233_v15 = vpop.permute.xlu1 %232  ;;  %v223_v16 = vpop.permute.xlu0 %222 }
  0xbb   : > { %v238_v17 = vpop.permute.xlu1 %237  ;;  %v228_v18 = vpop.permute.xlu0 %227 }
  0xfb   : > { %v483_v19 = vpop.f32.mrf.mxu0  ;;  %v486_v20 = vpop.f32.mrf.mxu1 }
  0xfc   : > { %v325_v21 = vadd.f32 %v483_v19, %v228_v18  ;;  %v335_v22 = vadd.f32 %v486_v20, %v238_v17 }
  0xfd   : > { %v319_v23 = vpop.f32.mrf.mxu0  ;;  %v329_v24 = vpop.f32.mrf.mxu1 }
  0xfe   : > { %339 = vst [vmem:[%s205_s4 + $0x8] sm:$0xff] %v325_v21  ;;  %341 = vst [vmem:[%s205_s4 + $0x18] sm:$0xff] %v335_v22  ;;  %v320_v25 = vadd.f32 %v319_v23, %v223_v16  ;;  %v330_v26 = vadd.f32 %v329_v24, %v233_v15 }
 0x100   : > { %338 = vst [vmem:[%s205_s4] sm:$0xff] %v320_v25  ;;  %340 = vst [vmem:[%s205_s4 + $0x10] sm:$0xff] %v330_v26 }
 0x101   : > { %612 = shalt.err (!%p609_p6)
}
 0x102   : > { %s613_s22 = scalar_lea.hbm %s831_s10, 512  ;;  %s617_s30 = scalar_lea.hbm %s882_s3, 1024 }
 0x103   : > { %p614_p4 = scmp.ne.s32.totalorder %s831_s10, %s613_s22  ;;  %p618_p13 = scmp.lt.s32.totalorder %s831_s10, %s882_s3 }
 0x104   : > { %p619_p2 = scmp.lt.s32.totalorder %s617_s30, %s613_s22 }
 0x105   : > { %p615_p7 = pnand %p614_p4, %p759_p9 }
 0x106   : > { %p620_p8 = por %p619_p2, %p618_p13 }
 0x107   : > { %p616_p10 = pneg %p615_p7 }
 0x109   : > { %p621_p12 = pnand %p620_p8, %p616_p10 }
 0x10b   : > { %624 = shalt.err (!%p621_p12)
}
 0x10c   : > { %s686_s4 = smov 128   ;;  %s687_s7 = smov 8  }
 0x10d   : > { %504 = dma.vmem_to_hbm [thread:$0]  (%p759_p9), %s826_s6, 512, %s831_s10, %s343_s15, %s686_s4, %s686_s4, %s687_s7  }
 0x10e PF: > { %s372_s8 = sand.u32 1, %s659_s12   ;;  %p888_p0 = scmp.ge.s32.totalorder %s679_s17, 2 }
 0x10f   : > { %s373_s9 = scalar_lea.sflag [#allocation4], %s372_s8 }
 0x110   : > { %p511_p1 = pnand %p888_p0, %p766_p11 }
 0x112   : > { %p512_p3 = pneg %p511_p1 }
 0x114   : > { %654 = dma.done.wait (%p512_p3), %s373_s9, 512  }
 0x115   : > { %656 = vsyncadd (%p512_p3), %s373_s9, 4294966784  ;;  %s19_s17 = sadd.s32 1, %s679_s17   ;;  %s889_s12 = smov %s663_s13 }
 0x116   : > { %p16_p5 = scmp.ge.s32.totalorder %s19_s17, 4   ;;  %s890_s13 = smov %s667_s14 }
 0x117   : > { %s891_s14 = smov %s764_s26  ;;  %s892_s15 = smov %s675_s16 }
 0x118   : > { %s893_s16 = smov %s895_s20  ;;  %18 = sbr.rel (!%p16_p5) target bundleno = 6 (0x6), region = 77 }
 0x11d   :  { %378 = vsyncpa [#allocation3], 1 }
 0x11e   :  { %380 = vsyncpa [#allocation3 + $0x1], 1 }
 0x11f   :  { %381 = vsyncpa [#allocation4], 1 }
 0x120   :  { %383 = vsyncpa [#allocation4 + $0x1], 1 }

</bundles_post_ra>
